<compile_context>
chip_gen: v7x
topology: tpu7x:2x2x1
jax: 0.10.0
libtpu: 0.0.40
codegen_flags: <defaults>
</compile_context>

<pallas_src>
import jax
import jax.numpy as jnp
from jax.experimental import pallas as pl
from jax.experimental.pallas import tpu as pltpu


# ----------------------------------------------------------------------------
# Kernel
# ----------------------------------------------------------------------------
def temporal_attention_kernel(x_ref, w1_ref, b1_ref, w2_ref, ctx_ref, attn_ref):
    Bb, T, H = x_ref.shape          # packed batch rows, time, hidden
    Hh = w1_ref.shape[1]            # hidden // 2

    x = x_ref[...]                                                   # (Bb, T, H)

    # --- Linear(H -> H//2) + tanh -------------------------------------------
    # One (Bb*T, H) @ (H, Hh) MXU pass over the whole chunk.  The reshape is a
    # free view whenever T % 8 == 0 (sublane tiles line up), and everything
    # downstream keeps this row-major (time-on-sublanes) layout.
    x2 = x.reshape(Bb * T, H)
    h = jnp.tanh(
        jnp.dot(x2, w1_ref[...], preferred_element_type=jnp.float32)
        + b1_ref[...].astype(jnp.float32))                           # (Bb*T, Hh)

    # --- Linear(H//2 -> 1): VPU multiply + lane reduce (no N=1 matmul) -------
    # b2 omitted: a constant shift is a no-op under softmax for both outputs.
    s = jnp.sum(h * w2_ref[...].astype(jnp.float32),
                axis=-1, keepdims=True)                              # (Bb*T, 1)
    s = s.reshape(Bb, T, 1)      # per-batch time column, T on sublanes (free view)

    # --- softmax over time (exact normalization) -----------------------------
    m = jnp.max(s, axis=1, keepdims=True)                            # (Bb, 1, 1)
    e = jnp.exp(s - m)                                               # (Bb, T, 1)
    w = e / jnp.sum(e, axis=1, keepdims=True)                        # rows sum to 1

    # --- context[b, :] = sum_t w[b, t] * x[b, t, :] ---------------------------
    # w is (Bb, T, 1): it broadcasts along the lane axis only (native splat),
    # so no XLU lane<->sublane relayout of a block-sized array is needed.
    ctx = jnp.sum(w * x.astype(jnp.float32), axis=1)                 # (Bb, H)
    ctx_ref[...] = ctx.astype(ctx_ref.dtype)

    # Lane-dense attention-weight output (relayout of a tiny (Bb, T) tile only).
    attn_ref[...] = w.reshape(Bb, T).astype(attn_ref.dtype)


# ----------------------------------------------------------------------------
# Block sizing / wrapper
# ----------------------------------------------------------------------------
def _cdiv(a, b):
    return (a + b - 1) // b


def _round_up(x, m):
    return _cdiv(x, m) * m


def _vmem_capacity_bytes():
    """Physical VMEM per core; conservative fallback if the query fails."""
    try:
        cap = getattr(pltpu.get_tpu_info(), "vmem_capacity_bytes", None)
        if cap:
            return int(cap)
    except Exception:
        pass
    return 64 * 1024 * 1024          # v7x per-core VMEM (smallest of the fleet)


def _pick_block_b(B, T, H, itemsize, vmem_budget_bytes):
    """Byte-driven block sizing (the kernel is HBM-bandwidth bound).

    Pick the largest block_b (multiple of 8) such that the (block_b, T, H)
    x block stays within ~1/6 of the VMEM budget (2x double-buffered input +
    ~2x live intermediates + outputs/headroom), capped at 12 MiB, while keeping
    at least 2 grid steps whenever B allows it (v7x megacore sharding).
    """
    row_bytes = max(T * H * itemsize, 1)
    block_bytes_cap = min(12 << 20, max(vmem_budget_bytes // 6, 1 << 20))
    bb = max(8, (block_bytes_cap // row_bytes) // 8 * 8)
    if B >= 16:
        bb = min(bb, _round_up(_cdiv(B, 2), 8))   # grid_b >= 2 -> both v7x TCs busy
    else:
        bb = min(bb, 8)                           # single (padded) 8-row block
    return bb


def temporal_attention(lstm_output, w1, b1, w2, b2=None, *, block_b=None,
                       vmem_budget_bytes=None):
    """lstm_output: (B, T, H).  w1: (H, H//2), b1: (H//2,) or (1, H//2),
    w2: (H//2, 1), b2 unused (constant pre-softmax shift, softmax-invariant).
    Returns (context_vector (B, H), attention_weights (B, T, 1))."""
    B, T, H = lstm_output.shape
    Hh = w1.shape[1]
    dtype = lstm_output.dtype
    itemsize = jnp.dtype(dtype).itemsize

    vmem_cap = _vmem_capacity_bytes()
    if vmem_budget_bytes is None:
        vmem_budget_bytes = int(vmem_cap * 0.75)

    if block_b is None:
        block_b = _pick_block_b(B, T, H, itemsize, vmem_budget_bytes)
    block_b = max(8, _round_up(int(block_b), 8))   # (block_b, H) output tiling rule

    grid_b = _cdiv(B, block_b)
    Bp = grid_b * block_b

    x = lstm_output
    if Bp != B:
        # Zero-pad the batch (covers prime / non-multiple-of-8 B); padded rows
        # produce harmless finite softmax rows that are sliced off below.
        x = jnp.pad(x, ((0, Bp - B), (0, 0), (0, 0)))

    b1_row = b1.reshape(1, Hh)
    w2_row = w2.reshape(1, Hh)       # (Hh, 1) -> (1, Hh) row for VPU broadcast

    # Explicit scoped-VMEM limit: 2x double-buffered x block + ~2x block of
    # live intermediates (h, the w*x product) + outputs/weights, with headroom,
    # clamped below physical VMEM (64 MiB on v7x, 128 MiB on v5e/v6e).
    x_block_bytes = block_b * T * H * itemsize
    vmem_limit = int(min(int(vmem_cap * 0.9),
                         max(32 << 20, 5 * x_block_bytes + (4 << 20))))

    ctx, attn = pl.pallas_call(
        temporal_attention_kernel,
        out_shape=(
            jax.ShapeDtypeStruct((Bp, H), dtype),   # context
            jax.ShapeDtypeStruct((Bp, T), dtype),   # attn weights (lane-dense)
        ),
        grid_spec=pltpu.PrefetchScalarGridSpec(
            num_scalar_prefetch=0,
            grid=(grid_b,),
            in_specs=[
                pl.BlockSpec((block_b, T, H), lambda b: (b, 0, 0)),  # lstm_output
                pl.BlockSpec((H, Hh), lambda b: (0, 0)),             # W1 (in, out)
                pl.BlockSpec((1, Hh), lambda b: (0, 0)),             # b1
                pl.BlockSpec((1, Hh), lambda b: (0, 0)),             # W2 row
            ],
            out_specs=[
                pl.BlockSpec((block_b, H), lambda b: (b, 0)),        # context
                pl.BlockSpec((block_b, T), lambda b: (b, 0)),        # attn weights
            ],
        ),
        compiler_params=pltpu.CompilerParams(
            dimension_semantics=("parallel",),       # shards chunks over v7x's 2 TCs
            vmem_limit_bytes=vmem_limit,
        ),
    )(x, w1, b1_row, w2_row)

    if Bp != B:
        ctx = ctx[:B]
        attn = attn[:B]

    # Layout plumbing back to the PyTorch convention: (B, T, 1).
    return ctx, attn[..., None]


# ----------------------------------------------------------------------------
# Pure-JAX reference (matches the PyTorch forward, b2 included)
# ----------------------------------------------------------------------------
def reference(lstm_output, w1, b1, w2, b2):
    scores = jnp.tanh(lstm_output @ w1 + b1.reshape(1, -1)) @ w2 + b2   # (B, T, 1)
    aw = jax.nn.softmax(scores, axis=1)                                  # over time
    ctx = jnp.sum(aw * lstm_output, axis=1)                              # (B, H)
    return ctx, aw


if __name__ == "__main__":
    B, T, H = 2, 8, 32
    Hh = H // 2

    key = jax.random.PRNGKey(0)
    k_x, k_w1, k_b1, k_w2, k_b2, k_x2 = jax.random.split(key, 6)

    lstm_output = jax.random.normal(k_x, (B, T, H), dtype=jnp.float32)
    # Deterministic synthetic parameters (not a checkpoint load).
    w1 = jax.random.normal(k_w1, (H, Hh), dtype=jnp.float32) * 0.1
    b1 = jax.random.normal(k_b1, (1, Hh), dtype=jnp.float32) * 0.1
    w2 = jax.random.normal(k_w2, (Hh, 1), dtype=jnp.float32) * 0.1
    b2 = jax.random.normal(k_b2, (1, 1), dtype=jnp.float32) * 0.1

    ctx, attn = temporal_attention(lstm_output, w1, b1, w2, b2)
    jax.block_until_ready((ctx, attn))

    ctx_ref, attn_ref = reference(lstm_output, w1, b1, w2, b2)
    assert ctx.shape == (B, H) and attn.shape == (B, T, 1)
    # Tolerance covers MXU-vs-XLA f32 matmul rounding only (softmax divide is exact).
    assert jnp.allclose(ctx, ctx_ref, atol=2e-3, rtol=2e-3)
    assert jnp.allclose(attn, attn_ref, atol=2e-3, rtol=2e-3)
    # Exact normalization: each attention row sums to 1 to f32 precision.
    assert jnp.allclose(jnp.sum(attn, axis=1), 1.0, atol=1e-5)

    # Second case with a non-multiple-of-8 batch to exercise the padding path
    # (same block shapes -> reuses the compiled kernel).
    B2 = 3
    x2 = jax.random.normal(k_x2, (B2, T, H), dtype=jnp.float32)
    ctx2, attn2 = temporal_attention(x2, w1, b1, w2, b2)
    jax.block_until_ready((ctx2, attn2))
    ctx2_ref, attn2_ref = reference(x2, w1, b1, w2, b2)
    assert ctx2.shape == (B2, H) and attn2.shape == (B2, T, 1)
    assert jnp.allclose(ctx2, ctx2_ref, atol=2e-3, rtol=2e-3)
    assert jnp.allclose(attn2, attn2_ref, atol=2e-3, rtol=2e-3)
    assert jnp.allclose(jnp.sum(attn2, axis=1), 1.0, atol=1e-5)

    print("KERNEL_OK")
</pallas_src>

<mosaic_0001>
module attributes {stable_mosaic.version = 11 : i64} {
  func.func @temporal_attention_kernel(%arg0: i32, %arg1: memref<8x8x32xf32, #tpu.memory_space<vmem>>, %arg2: memref<32x16xf32, #tpu.memory_space<vmem>>, %arg3: memref<1x16xf32, #tpu.memory_space<vmem>>, %arg4: memref<1x16xf32, #tpu.memory_space<vmem>>, %arg5: memref<8x32xf32, #tpu.memory_space<vmem>>, %arg6: memref<8x8xf32, #tpu.memory_space<vmem>>) attributes {dimension_semantics = [#tpu.dimension_semantics<parallel>], iteration_bounds = array<i64: 1>, scalar_prefetch = 0 : i64, scratch_operands = 0 : i64, tpu.core_type = #tpu.core_type<tc>, window_params = [{transform_indices = @transform_0, window_bounds = array<i64: 8, 8, 32>}, {pipeline_mode = #tpu.pipeline_mode<synchronous>, transform_indices = @transform_1, window_bounds = array<i64: 32, 16>}, {pipeline_mode = #tpu.pipeline_mode<synchronous>, transform_indices = @transform_2, window_bounds = array<i64: 1, 16>}, {pipeline_mode = #tpu.pipeline_mode<synchronous>, transform_indices = @transform_3, window_bounds = array<i64: 1, 16>}, {transform_indices = @transform_4, window_bounds = array<i64: 8, 32>}, {transform_indices = @transform_5, window_bounds = array<i64: 8, 8>}]} {
    %c0 = arith.constant 0 : index
    %c0_0 = arith.constant 0 : index
    %c0_1 = arith.constant 0 : index
    %0 = vector.load %arg1[%c0, %c0_0, %c0_1] : memref<8x8x32xf32, #tpu.memory_space<vmem>>, vector<8x8x32xf32>
    %1 = vector.shape_cast %0 : vector<8x8x32xf32> to vector<64x32xf32>
    %c0_2 = arith.constant 0 : index
    %c0_3 = arith.constant 0 : index
    %2 = vector.load %arg2[%c0_2, %c0_3] : memref<32x16xf32, #tpu.memory_space<vmem>>, vector<32x16xf32>
    %cst = arith.constant dense<0.000000e+00> : vector<64x16xf32>
    %3 = tpu.matmul %1, %2, %cst {dimension_numbers = #tpu.dot_dimension_numbers<[1], [0], [0], [1], [0, 0, 1, 1], [], []>} : vector<64x32xf32>, vector<32x16xf32>, vector<64x16xf32> -> vector<64x16xf32>
    %c0_4 = arith.constant 0 : index
    %c0_5 = arith.constant 0 : index
    %4 = vector.load %arg3[%c0_4, %c0_5] : memref<1x16xf32, #tpu.memory_space<vmem>>, vector<1x16xf32>
    %5 = vector.broadcast %4 : vector<1x16xf32> to vector<64x16xf32>
    %6 = arith.addf %3, %5 : vector<64x16xf32>
    %7 = math.tanh %6 : vector<64x16xf32>
    %c0_6 = arith.constant 0 : index
    %c0_7 = arith.constant 0 : index
    %8 = vector.load %arg4[%c0_6, %c0_7] : memref<1x16xf32, #tpu.memory_space<vmem>>, vector<1x16xf32>
    %9 = vector.broadcast %8 : vector<1x16xf32> to vector<64x16xf32>
    %10 = arith.mulf %7, %9 : vector<64x16xf32>
    %cst_8 = arith.constant dense<0.000000e+00> : vector<64xf32>
    %11 = vector.multi_reduction <add>, %10, %cst_8 [1] : vector<64x16xf32> to vector<64xf32>
    %12 = vector.shape_cast %11 : vector<64xf32> to vector<64x1xf32>
    %13 = vector.shape_cast %12 : vector<64x1xf32> to vector<8x8x1xf32>
    %cst_9 = arith.constant dense<0xFF800000> : vector<8x1xf32>
    %14 = vector.multi_reduction <maximumf>, %13, %cst_9 [1] : vector<8x8x1xf32> to vector<8x1xf32>
    %15 = vector.shape_cast %14 : vector<8x1xf32> to vector<8x1x1xf32>
    %16 = vector.broadcast %15 : vector<8x1x1xf32> to vector<8x8x1xf32>
    %17 = arith.subf %13, %16 : vector<8x8x1xf32>
    %18 = math.exp %17 : vector<8x8x1xf32>
    %cst_10 = arith.constant dense<0.000000e+00> : vector<8x1xf32>
    %19 = vector.multi_reduction <add>, %18, %cst_10 [1] : vector<8x8x1xf32> to vector<8x1xf32>
    %20 = vector.shape_cast %19 : vector<8x1xf32> to vector<8x1x1xf32>
    %21 = vector.broadcast %20 : vector<8x1x1xf32> to vector<8x8x1xf32>
    %22 = arith.divf %18, %21 : vector<8x8x1xf32>
    %23 = vector.broadcast %22 : vector<8x8x1xf32> to vector<8x8x32xf32>
    %24 = arith.mulf %23, %0 : vector<8x8x32xf32>
    %cst_11 = arith.constant dense<0.000000e+00> : vector<8x32xf32>
    %25 = vector.multi_reduction <add>, %24, %cst_11 [1] : vector<8x8x32xf32> to vector<8x32xf32>
    %c0_12 = arith.constant 0 : index
    %c0_13 = arith.constant 0 : index
    %26 = vector.load %arg5[%c0_12, %c0_13] : memref<8x32xf32, #tpu.memory_space<vmem>>, vector<8x32xf32>
    tpu.vector_store %arg5[%c0_12, %c0_13], %25 {strides = array<i32>} : memref<8x32xf32, #tpu.memory_space<vmem>>, vector<8x32xf32>,
    %27 = vector.shape_cast %22 : vector<8x8x1xf32> to vector<8x8xf32>
    %c0_14 = arith.constant 0 : index
    %c0_15 = arith.constant 0 : index
    %28 = vector.load %arg6[%c0_14, %c0_15] : memref<8x8xf32, #tpu.memory_space<vmem>>, vector<8x8xf32>
    tpu.vector_store %arg6[%c0_14, %c0_15], %27 {strides = array<i32>} : memref<8x8xf32, #tpu.memory_space<vmem>>, vector<8x8xf32>,
    return
  }
  func.func @transform_0(%arg0: i32) -> (i32, i32, i32) {
    %c0_i32 = arith.constant 0 : i32
    %c0_i32_0 = arith.constant 0 : i32
    %c0_i32_1 = arith.constant 0 : i32
    return %arg0, %c0_i32, %c0_i32_0 : i32, i32, i32
  }
  func.func @transform_1(%arg0: i32) -> (i32, i32) {
    %c0_i32 = arith.constant 0 : i32
    %c0_i32_0 = arith.constant 0 : i32
    %c0_i32_1 = arith.constant 0 : i32
    return %c0_i32, %c0_i32_0 : i32, i32
  }
  func.func @transform_2(%arg0: i32) -> (i32, i32) {
    %c0_i32 = arith.constant 0 : i32
    %c0_i32_0 = arith.constant 0 : i32
    %c0_i32_1 = arith.constant 0 : i32
    return %c0_i32, %c0_i32_0 : i32, i32
  }
  func.func @transform_3(%arg0: i32) -> (i32, i32) {
    %c0_i32 = arith.constant 0 : i32
    %c0_i32_0 = arith.constant 0 : i32
    %c0_i32_1 = arith.constant 0 : i32
    return %c0_i32, %c0_i32_0 : i32, i32
  }
  func.func @transform_4(%arg0: i32) -> (i32, i32) {
    %c0_i32 = arith.constant 0 : i32
    %c0_i32_0 = arith.constant 0 : i32
    return %arg0, %c0_i32 : i32, i32
  }
  func.func @transform_5(%arg0: i32) -> (i32, i32) {
    %c0_i32 = arith.constant 0 : i32
    %c0_i32_0 = arith.constant 0 : i32
    return %arg0, %c0_i32 : i32, i32
  }
}

</mosaic_0001>

<bundles_post_ra>
// kernel: tpu_custom_call.1
= control target key start
LH: loop header
LB: loop body
LE: loop exit
PB: predicated region body
PF: predicated region fallthrough
CT: control target
= control target key end

     0   :  { %11 = vsyncpa [#allocation3], 0  ;;  %s927_s0 = inlined_call_operand.hbm [shape: f32[8,8,32], index: 0, kind: input, shape index: {}]   ;;  %s928_s1 = inlined_call_operand.vmem [shape: f32[32,16], index: 1, kind: input, shape index: {}]   ;;  %s929_s2 = inlined_call_operand.vmem [shape: f32[1,16], index: 2, kind: input, shape index: {}]   ;;  %s930_s3 = inlined_call_operand.vmem [shape: f32[1,16], index: 3, kind: input, shape index: {}]   ;;  %s931_s4 = inlined_call_operand.hbm [shape: f32[8,32], index: 4, kind: output, shape index: {0}]   ;;  %s932_s5 = inlined_call_operand.hbm [shape: f32[8,8], index: 5, kind: output, shape index: {1}]  }
   0x1   :  { %12 = vsyncpa [#allocation4], 0 }
   0x2   :  { %13 = vsyncpa [#allocation7], 0  ;;  %s716_s18 = smov [#allocation2]   ;;  %s644_s22 = scalar_lea.hbm %s927_s0, 1024 }
   0x3   :  { %s19_s19 = sshll.u32 %s716_s18, 4  ;;  %p645_p0 = scmp.ne.s32.totalorder %s927_s0, %s644_s22  ;;  %s20_s19 = int_to_ptr.vmem [resolvable:$true] %s19_s19 }
   0x4   :  { %p648_p1 = scmp.lt.u32.totalorder %s644_s22, %s927_s0 }
   0x6   :  { %p650_p2 = pnand %p648_p1, %p645_p0 }
   0x8   :  { %653 = shalt.err (!%p650_p2)
}
   0x9   :  { %s654_s27 = scalar_lea.vmem %s20_s19, 1024  ;;  %p659_p4 = scmp.lt.s32.totalorder %s20_s19, %s20_s19 }
   0xa   :  { %p655_p3 = scmp.ne.s32.totalorder %s20_s19, %s654_s27  ;;  %p660_p5 = scmp.lt.s32.totalorder %s654_s27, %s654_s27 }
   0xc   :  { %p661_p6 = por %p660_p5, %p659_p4 }
   0xe   :  { %p662_p7 = pnand %p661_p6, %p655_p3 }
  0x10   :  { %665 = shalt.err (!%p662_p7)
}
  0x11   :  { %s717_s28 = smov 128   ;;  %s718_s29 = smov 8  }
  0x12   :  { %25 = dma.hbm_to_vmem [thread:$0]  %s927_s0, 1024, %s20_s19, [#allocation3], %s717_s28, %s717_s28, %s718_s29  }
  0x13   :  { %710 = dma.done.wait [#allocation3], 1024  }
  0x14   :  { %711 = vsyncadd [#allocation3], 4294966272  ;;  %vm54_vm0 = vcmask 261120   ;;  %v43_v0 = vld [vmem:[%s928_s1] sm:$0xff]  ;;  %v44_v1 = vld [vmem:[%s928_s1 + $0x8] sm:$0xff]  ;;  %vm207_vm1 = vcmask 130048  }
  0x15   :  { %v45_v2 = vld [vmem:[%s928_s1 + $0x10] sm:$0xff]  ;;  %v579_v3 = vpack.c.bf16 %v44_v1, %v43_v0  ;;  %v46_v4 = vld [vmem:[%s928_s1 + $0x18] sm:$0xff]  ;;  %v775_v5 = vld [vmem:[#allocation2] sm:$0xff]  ;;  %vm440_vm2 = vcmask 1041409   ;;  %vm442_vm3 = vcmask 1042434   ;;  %vm444_vm4 = vcmask 1043459  }
  0x16   :  { %v583_v6 = vpack.c.bf16 %v46_v4, %v45_v2  ;;  %567 = vmatprep.mubr.msk.f32.mxu0 %vm54_vm0, %v775_v5  ;;  %v779_v7 = vld [vmem:[#allocation2 + $0x20] sm:$0xff]  ;;  %v783_v8 = vld [vmem:[#allocation2 + $0x8] sm:$0xff]  ;;  %v787_v10 = vld [vmem:[#allocation2 + $0x10] sm:$0xff]  ;;  %vm446_vm5 = vcmask 1044484   ;;  %vm448_vm6 = vcmask 1045509   ;;  %vm450_vm7 = vcmask 1046534  }
  0x17   :  { %580 = vmatprep.subr.bf16.mxu0 %v579_v3  ;;  %587 = vmatprep.subr.bf16.mxu1 %v579_v3  ;;  %v785_v9 = vld [vmem:[#allocation2 + $0x28] sm:$0xff]  ;;  %v789_v11 = vld [vmem:[#allocation2 + $0x30] sm:$0xff]  ;;  %v797_v12 = vld [vmem:[#allocation2 + $0x18] sm:$0xff]  ;;  %vm452_vm8 = vcmask 1047559   ;;  %vm506_vm9 = vcmask 64512  }
  0x18   :  { %582 = vmatpush3.bf16.msra.mxu0 %v579_v3  ;;  %589 = vmatpush3.bf16.msra.mxu1 %v579_v3  ;;  %v801_v13 = vld [vmem:[#allocation2 + $0x38] sm:$0xff]  ;;  %v537_v14 = vld [vmem:[%s929_s2] ss:$0 sm:$0xff] }
  0x19   :  { %584 = vmatprep.subr.bf16.mxu0 %v583_v6  ;;  %588 = vmatprep.subr.bf16.mxu1 %v583_v6  ;;  %v546_v31 = vld [vmem:[%s930_s3] ss:$0 sm:$0xff]  ;;  %s719_s3 = smov [#allocation6]  }
  0x1a   :  { %573 = vmatprep.mubr.msk.f32.mxu1 %vm54_vm0, %v779_v7  ;;  %s524_s16 = sshll.u32 %s719_s3, 4  ;;  %s525_s16 = int_to_ptr.vmem [resolvable:$true] %s524_s16 }
  0x1b   :  { %s666_s17 = scalar_lea.vmem %s525_s16, 128  ;;  %p671_p9 = scmp.lt.s32.totalorder %s525_s16, %s525_s16 }
  0x1c   :  { %586 = vmatpush3.bf16.msra.mxu0 %v583_v6  ;;  %590 = vmatpush3.bf16.msra.mxu1 %v583_v6  ;;  %p667_p8 = scmp.ne.s32.totalorder %s525_s16, %s666_s17  ;;  %p672_p10 = scmp.lt.s32.totalorder %s666_s17, %s666_s17 }
  0x1e   :  { %p673_p11 = por %p672_p10, %p671_p9 }
  0x1f   :  { %568 = vmatmul.mubr.msk.f32.vlgmr.msra.gmra.mrb[0].mxu0 %vm54_vm0, %v783_v8  ;;  %574 = vmatmul.mubr.msk.f32.vlgmr.msra.gmra.mrb[0].mxu1 %vm54_vm0, %v785_v9 }
  0x20   :  { %570 = vmatprep.mubr.msk.f32.mxu0 %vm54_vm0, %v787_v10  ;;  %576 = vmatprep.mubr.msk.f32.mxu1 %vm54_vm0, %v789_v11  ;;  %p674_p12 = pnand %p673_p11, %p667_p8 }
  0x23   :  { %571 = vmatmul.mubr.msk.f32.gmra.mrb[2].mxu0 %vm54_vm0, %v797_v12  ;;  %577 = vmatmul.mubr.msk.f32.gmra.mrb[2].mxu1 %vm54_vm0, %v801_v13 }
  0xf2   :  { %v569_v15 = vpop.f32.mrb[0].mxu0  ;;  %v575_v16 = vpop.f32.mrb[0].mxu1 }
  0xf3   :  { %v151_v17 = vadd.f32 %v569_v15, %v537_v14  ;;  %v145_v18 = vpop.f32.mrb[1].mxu0  ;;  %v165_v19 = vpop.f32.mrb[1].mxu1  ;;  %v171_v29 = vadd.f32 %v575_v16, %v537_v14 }
  0xf4   :  { %v146_v20 = vadd.f32 %v537_v14, %v145_v18  ;;  %v166_v21 = vadd.f32 %v537_v14, %v165_v19 }
  0xf5   :  { %596 = vtanh.f32 %v151_v17 }
  0xf6   :  { %598 = vtanh.f32 %v146_v20  ;;  %v572_v22 = vpop.f32.mrb[2].mxu0  ;;  %v578_v23 = vpop.f32.mrb[2].mxu1 }
  0xf7   :  { %v161_v24 = vadd.f32 %v572_v22, %v537_v14  ;;  %v155_v25 = vpop.f32.mrb[3].mxu0  ;;  %v175_v26 = vpop.f32.mrb[3].mxu1  ;;  %600 = vtanh.f32 %v166_v21  ;;  %v181_v30 = vadd.f32 %v578_v23, %v537_v14 }
  0xf8   :  { %v156_v27 = vadd.f32 %v537_v14, %v155_v25  ;;  %v176_v28 = vadd.f32 %v537_v14, %v175_v26 }
  0xf9   :  { %602 = vtanh.f32 %v161_v24 }
  0xfa   :  { %604 = vtanh.f32 %v156_v27 }
  0xfb   :  { %606 = vtanh.f32 %v176_v28 }
  0xfc   :  { %608 = vtanh.f32 %v171_v29 }
  0xfd   :  { %610 = vtanh.f32 %v181_v30 }
  0xff   :  { %v597_v32 = vpop.eup %596 }
 0x100   :  { %v599_v33 = vpop.eup %598  ;;  %v200_v34 = vmul.f32 %v597_v32, %v546_v31 }
 0x101   :  { %v601_v35 = vpop.eup %600  ;;  %v199_v37 = vmul.f32 %v599_v33, %v546_v31 }
 0x102   :  { %v211_v36 = vsel %vm207_vm1, %v200_v34, 0.0  ;;  %v203_v41 = vmul.f32 %v601_v35, %v546_v31 }
 0x103   :  { %v603_v38 = vpop.eup %602  ;;  %212 = vadd.xlane.f32.xlu0 %v211_v36  ;;  %v208_v44 = vsel %vm207_vm1, %v199_v37, 0.0 }
 0x104   :  { %v605_v39 = vpop.eup %604  ;;  %v202_v40 = vmul.f32 %v603_v38, %v546_v31  ;;  %v220_v47 = vsel %vm207_vm1, %v203_v41, 0.0 }
 0x105   :  { %v607_v42 = vpop.eup %606  ;;  %v201_v45 = vmul.f32 %v605_v39, %v546_v31 }
 0x106   :  { %v217_v43 = vsel %vm207_vm1, %v202_v40, 0.0  ;;  %v609_v46 = vpop.eup %608  ;;  %v205_v48 = vmul.f32 %v607_v42, %v546_v31 }
 0x107   :  { %218 = vadd.xlane.f32.xlu1 %v217_v43  ;;  %209 = vadd.xlane.f32.xlu0 %v208_v44  ;;  %v214_v49 = vsel %vm207_vm1, %v201_v45, 0.0  ;;  %v204_v50 = vmul.f32 %v609_v46, %v546_v31  ;;  %v611_v51 = vpop.eup %610 }
 0x108   :  { %v226_v52 = vsel %vm207_vm1, %v205_v48, 0.0  ;;  %v206_v54 = vmul.f32 %v611_v51, %v546_v31 }
 0x109   :  { %v223_v53 = vsel %vm207_vm1, %v204_v50, 0.0 }
 0x10a   :  { %v229_v55 = vsel %vm207_vm1, %v206_v54, 0.0 }
 0x10b   :  { %215 = vadd.xlane.f32.xlu1 %v214_v49  ;;  %221 = vadd.xlane.f32.xlu0 %v220_v47 }
 0x10f   :  { %224 = vadd.xlane.f32.xlu1 %v223_v53  ;;  %227 = vadd.xlane.f32.xlu0 %v226_v52 }
 0x113   :  { %230 = vadd.xlane.f32.xlu1 %v229_v55 }
 0x190   :  { %v213_v56 = vpop.xlane.xlu0 %212 }
 0x191   :  { %v238_v57 = vrot.slane %v213_v56, 4 }
 0x193   :  { %v239_v58 = vmax.f32 %v213_v56, %v238_v57 }
 0x194   :  { %v219_v59 = vpop.xlane.xlu1 %218  ;;  %v210_v60 = vpop.xlane.xlu0 %209 }
 0x195   :  { %v240_v61 = vrot.slane %v239_v58, 2  ;;  %v250_v62 = vrot.slane %v219_v59, 4  ;;  %v232_v63 = vrot.slane %v210_v60, 4 }
 0x197   :  { %v241_v0 = vmax.f32 %v239_v58, %v240_v61  ;;  %v251_v1 = vmax.f32 %v219_v59, %v250_v62  ;;  %v233_v2 = vmax.f32 %v210_v60, %v232_v63 }
 0x198   :  { %v216_v3 = vpop.xlane.xlu1 %215  ;;  %v222_v4 = vpop.xlane.xlu0 %221 }
 0x199   :  { %v242_v6 = vrot.slane %v241_v0, 1  ;;  %v252_v14 = vrot.slane %v251_v1, 2  ;;  %v234_v15 = vrot.slane %v233_v2, 2  ;;  %v244_v16 = vrot.slane %v216_v3, 4 }
 0x19a   :  { %v256_v17 = vrot.slane %v222_v4, 4 }
 0x19b   :  { %v243_v18 = vmax.f32 %v241_v0, %v242_v6  ;;  %v253_v19 = vmax.f32 %v251_v1, %v252_v14  ;;  %v235_v20 = vmax.f32 %v233_v2, %v234_v15  ;;  %v245_v21 = vmax.f32 %v216_v3, %v244_v16 }
 0x19c   :  { %v257_v22 = vmax.f32 %v222_v4, %v256_v17  ;;  %v225_v23 = vpop.xlane.xlu1 %224  ;;  %v228_v24 = vpop.xlane.xlu0 %227 }
 0x19d   :  { %v281_v25 = vsub.f32 %v213_v56, %v243_v18  ;;  %v254_v26 = vrot.slane %v253_v19, 1  ;;  %v236_v27 = vrot.slane %v235_v20, 1  ;;  %v246_v28 = vrot.slane %v245_v21, 2 }
 0x19e   :  { %v258_v29 = vrot.slane %v257_v22, 2  ;;  %v262_v30 = vrot.slane %v225_v23, 4  ;;  %v268_v31 = vrot.slane %v228_v24, 4 }
 0x19f   :  { %v290_v32 = vmul.f32 1.442695, %v281_v25  ;;  %v255_v33 = vmax.f32 %v253_v19, %v254_v26  ;;  %v237_v34 = vmax.f32 %v235_v20, %v236_v27  ;;  %v247_v35 = vmax.f32 %v245_v21, %v246_v28 }
 0x1a0   :  { %v259_v36 = vmax.f32 %v257_v22, %v258_v29  ;;  %v263_v37 = vmax.f32 %v225_v23, %v262_v30  ;;  %v269_v38 = vmax.f32 %v228_v24, %v268_v31  ;;  %v231_v39 = vpop.xlane.xlu1 %230 }
 0x1a1   :  { %612 = vpow2.f32 %v290_v32  ;;  %v283_v40 = vsub.f32 %v219_v59, %v255_v33  ;;  %v280_v41 = vsub.f32 %v210_v60, %v237_v34  ;;  %v248_v42 = vrot.slane %v247_v35, 1 }
 0x1a2   :  { %v260_v43 = vrot.slane %v259_v36, 1  ;;  %v264_v44 = vrot.slane %v263_v37, 2  ;;  %v270_v45 = vrot.slane %v269_v38, 2  ;;  %v274_v46 = vrot.slane %v231_v39, 4 }
 0x1a3   :  { %v294_v47 = vmul.f32 1.442695, %v283_v40  ;;  %v288_v48 = vmul.f32 1.442695, %v280_v41  ;;  %v249_v49 = vmax.f32 %v247_v35, %v248_v42 }
 0x1a4   :  { %v261_v50 = vmax.f32 %v259_v36, %v260_v43  ;;  %v265_v51 = vmax.f32 %v263_v37, %v264_v44  ;;  %v271_v52 = vmax.f32 %v269_v38, %v270_v45  ;;  %v275_v53 = vmax.f32 %v231_v39, %v274_v46 }
 0x1a5   :  { %614 = vpow2.f32 %v294_v47  ;;  %v282_v54 = vsub.f32 %v216_v3, %v249_v49 }
 0x1a6   :  { %616 = vpow2.f32 %v288_v48  ;;  %v284_v55 = vsub.f32 %v222_v4, %v261_v50  ;;  %v266_v56 = vrot.slane %v265_v51, 1  ;;  %v272_v57 = vrot.slane %v271_v52, 1 }
 0x1a7   :  { %v292_v58 = vmul.f32 1.442695, %v282_v54  ;;  %v276_v59 = vrot.slane %v275_v53, 2 }
 0x1a8   :  { %v296_v60 = vmul.f32 1.442695, %v284_v55  ;;  %v267_v61 = vmax.f32 %v265_v51, %v266_v56  ;;  %v273_v62 = vmax.f32 %v271_v52, %v272_v57 }
 0x1a9   :  { %618 = vpow2.f32 %v292_v58  ;;  %v277_v63 = vmax.f32 %v275_v53, %v276_v59 }
 0x1aa   :  { %620 = vpow2.f32 %v296_v60  ;;  %v285_v0 = vsub.f32 %v225_v23, %v267_v61  ;;  %v286_v1 = vsub.f32 %v228_v24, %v273_v62  ;;  %v464_v62 = vlaneseq }
 0x1ab   :  { %v821_v2 = vpop.eup %612  ;;  %v278_v6 = vrot.slane %v277_v63, 1 }
 0x1ac   :  { %v310_v14 = vrot.slane %v821_v2, 4  ;;  %v298_v3 = vmul.f32 1.442695, %v285_v0  ;;  %v300_v15 = vmul.f32 1.442695, %v286_v1 }
 0x1ad   :  { %v279_v4 = vmax.f32 %v277_v63, %v278_v6 }
 0x1ae   :  { %v311_v16 = vadd.f32 %v821_v2, %v310_v14  ;;  %622 = vpow2.f32 %v298_v3 }
 0x1af   :  { %v825_v17 = vpop.eup %614  ;;  %624 = vpow2.f32 %v300_v15  ;;  %v287_v18 = vsub.f32 %v231_v39, %v279_v4 }
 0x1b0   :  { %v827_v19 = vpop.eup %616  ;;  %v312_v20 = vrot.slane %v311_v16, 2  ;;  %v322_v21 = vrot.slane %v825_v17, 4 }
 0x1b1   :  { %v304_v22 = vrot.slane %v827_v19, 4  ;;  %v302_v23 = vmul.f32 1.442695, %v287_v18  ;;  %v467_v18 = vshrl.u32 %v464_v62, 7 }
 0x1b2   :  { %v313_v24 = vadd.f32 %v312_v20, %v311_v16  ;;  %v323_v25 = vadd.f32 %v825_v17, %v322_v21  ;;  %v465_v16 = vand.u32 127, %v464_v62 }
 0x1b3   :  { %v832_v26 = vpop.eup %618  ;;  %v305_v27 = vadd.f32 %v827_v19, %v304_v22  ;;  %626 = vpow2.f32 %v302_v23 }
 0x1b4   :  { %v835_v28 = vpop.eup %620  ;;  %v314_v29 = vrot.slane %v313_v24, 1  ;;  %v324_v30 = vrot.slane %v323_v25, 2  ;;  %v316_v31 = vrot.slane %v832_v26, 4 }
 0x1b5   :  { %v306_v32 = vrot.slane %v305_v27, 2  ;;  %v328_v33 = vrot.slane %v835_v28, 4 }
 0x1b6   :  { %v315_v34 = vadd.f32 %v314_v29, %v313_v24  ;;  %v325_v35 = vadd.f32 %v324_v30, %v323_v25  ;;  %v317_v36 = vadd.f32 %v832_v26, %v316_v31  ;;  %v857_v30 = vsub.s32 %v465_v16, %v467_v18 }
 0x1b7   :  { %v307_v37 = vadd.f32 %v306_v32, %v305_v27  ;;  %v329_v38 = vadd.f32 %v835_v28, %v328_v33 }
 0x1b8   :  { %v841_v39 = vpop.eup %622  ;;  %628 = vrcp.f32 %v315_v34  ;;  %v326_v40 = vrot.slane %v325_v35, 1  ;;  %v318_v41 = vrot.slane %v317_v36, 2 }
 0x1b9   :  { %v843_v42 = vpop.eup %624  ;;  %v308_v43 = vrot.slane %v307_v37, 1  ;;  %v330_v44 = vrot.slane %v329_v38, 2  ;;  %v334_v45 = vrot.slane %v841_v39, 4 }
 0x1ba   :  { %v327_v46 = vadd.f32 %v326_v40, %v325_v35  ;;  %v319_v47 = vadd.f32 %v318_v41, %v317_v36  ;;  %v340_v48 = vrot.slane %v843_v42, 4 }
 0x1bb   :  { %v309_v49 = vadd.f32 %v308_v43, %v307_v37  ;;  %v331_v50 = vadd.f32 %v330_v44, %v329_v38  ;;  %v335_v51 = vadd.f32 %v841_v39, %v334_v45 }
 0x1bc   :  { %630 = vrcp.f32 %v327_v46  ;;  %v320_v52 = vrot.slane %v319_v47, 1  ;;  %v341_v53 = vadd.f32 %v843_v42, %v340_v48 }
 0x1bd   :  { %v849_v54 = vpop.eup %626  ;;  %632 = vrcp.f32 %v309_v49  ;;  %v332_v55 = vrot.slane %v331_v50, 1  ;;  %v336_v56 = vrot.slane %v335_v51, 2 }
 0x1be   :  { %v321_v57 = vadd.f32 %v320_v52, %v319_v47  ;;  %v342_v58 = vrot.slane %v341_v53, 2  ;;  %v346_v59 = vrot.slane %v849_v54, 4 }
 0x1bf   :  { %v333_v60 = vadd.f32 %v332_v55, %v331_v50  ;;  %v337_v61 = vadd.f32 %v336_v56, %v335_v51 }
 0x1c0   :  { %634 = vrcp.f32 %v321_v57  ;;  %v343_v63 = vadd.f32 %v342_v58, %v341_v53  ;;  %v347_v0 = vadd.f32 %v849_v54, %v346_v59 }
 0x1c1   :  { %636 = vrcp.f32 %v333_v60  ;;  %v338_v1 = vrot.slane %v337_v61, 1 }
 0x1c2   :  { %v629_v6 = vpop.eup %628  ;;  %v344_v14 = vrot.slane %v343_v63, 1  ;;  %v348_v3 = vrot.slane %v347_v0, 2 }
 0x1c3   :  { %v355_v15 = vmul.f32 %v629_v6, %v821_v2  ;;  %v339_v4 = vadd.f32 %v338_v1, %v337_v61 }
 0x1c4   :  { %v349_v20 = vadd.f32 %v348_v3, %v347_v0  ;;  %v345_v21 = vadd.f32 %v344_v14, %v343_v63 }
 0x1c5   :  { %638 = vrcp.f32 %v339_v4  ;;  %v369_v22 = vmul.f32 %v355_v15, %v783_v8 }
 0x1c6   :  { %v631_v23 = vpop.eup %630  ;;  %v350_v24 = vrot.slane %v349_v20, 1  ;;  %640 = vrcp.f32 %v345_v21 }
 0x1c7   :  { %v633_v25 = vpop.eup %632  ;;  %v359_v27 = vmul.f32 %v631_v23, %v825_v17  ;;  %v383_v29 = vsel %vm54_vm0, %v369_v22, 0.0 }
 0x1c8   :  { %v353_v2 = vmul.f32 %v633_v25, %v827_v19  ;;  %v351_v31 = vadd.f32 %v350_v24, %v349_v20  ;;  %v384_v32 = vrot.slane %v383_v29, 4  ;;  %v473_v19 = vrot.slane %v355_v15, %v857_v30 }
 0x1c9   :  { %v371_v33 = vmul.f32 %v359_v27, %v797_v12  ;;  %v481_v51 = vrot.slane %v359_v27, %v857_v30 }
 0x1ca   :  { %v635_v8 = vpop.eup %634  ;;  %642 = vrcp.f32 %v351_v31  ;;  %v368_v34 = vmul.f32 %v353_v2, %v775_v5  ;;  %v385_v35 = vadd.f32 %v384_v32, %v383_v29  ;;  %v469_v17 = vrot.slane %v353_v2, %v857_v30 }
 0x1cb   :  { %v637_v36 = vpop.eup %636  ;;  %v357_v37 = vmul.f32 %v635_v8, %v832_v26  ;;  %v397_v38 = vsel %vm54_vm0, %v371_v33, 0.0 }
 0x1cc   :  { %v361_v12 = vmul.f32 %v637_v36, %v835_v28  ;;  %v376_v40 = vsel %vm54_vm0, %v368_v34, 0.0  ;;  %v386_v41 = vrot.slane %v385_v35, 2  ;;  %v398_v43 = vrot.slane %v397_v38, 4 }
 0x1cd   :  { %v370_v44 = vmul.f32 %v357_v37, %v787_v10  ;;  %v377_v5 = vrot.slane %v376_v40, 4  ;;  %v477_v45 = vrot.slane %v357_v37, %v857_v30  ;;  %v498_v48 = vsel %vm440_vm2, %v473_v19, %v469_v17 }
 0x1ce   :  { %v372_v46 = vmul.f32 %v361_v12, %v779_v7  ;;  %v387_v26 = vadd.f32 %v386_v41, %v385_v35  ;;  %v399_v47 = vadd.f32 %v398_v43, %v397_v38  ;;  %v485_v60 = vrot.slane %v361_v12, %v857_v30 }
 0x1cf   :  { %v639_v49 = vpop.eup %638  ;;  %v378_v50 = vadd.f32 %v377_v5, %v376_v40  ;;  %v390_v28 = vsel %vm54_vm0, %v370_v44, 0.0  ;;  %v499_v52 = vsel %vm442_vm3, %v477_v45, %v498_v48 }
 0x1d0   :  { %v641_v10 = vpop.eup %640  ;;  %v363_v53 = vmul.f32 %v639_v49, %v841_v39  ;;  %v388_v55 = vrot.slane %v387_v26, 1  ;;  %v391_v56 = vrot.slane %v390_v28, 4  ;;  %v400_v57 = vrot.slane %v399_v47, 2 }
 0x1d1   :  { %v365_v7 = vmul.f32 %v641_v10, %v843_v42  ;;  %v379_v58 = vrot.slane %v378_v50, 2  ;;  %v404_v59 = vsel %vm54_vm0, %v372_v46, 0.0  ;;  %v500_v0 = vsel %vm444_vm4, %v481_v51, %v499_v52 }
 0x1d2   :  { %v373_v61 = vmul.f32 %v363_v53, %v785_v9  ;;  %v392_v62 = vadd.f32 %v391_v56, %v390_v28  ;;  %v401_v63 = vadd.f32 %v400_v57, %v399_v47  ;;  %v389_v6 = vadd.f32 %v388_v55, %v387_v26 }
 0x1d3   :  { %v374_v39 = vmul.f32 %v365_v7, %v789_v11  ;;  %v380_v1 = vadd.f32 %v379_v58, %v378_v50  ;;  %v405_v14 = vrot.slane %v404_v59, 4  ;;  %v489_v16 = vrot.slane %v363_v53, %v857_v30 }
 0x1d4   :  { %v643_v3 = vpop.eup %642  ;;  %v393_v15 = vrot.slane %v392_v62, 2  ;;  %v402_v42 = vrot.slane %v401_v63, 1  ;;  %v411_v4 = vsel %vm54_vm0, %v373_v61, 0.0  ;;  %v493_v11 = vrot.slane %v365_v7, %v857_v30 }
 0x1d5   :  { %v367_v18 = vmul.f32 %v643_v3, %v849_v54  ;;  %v381_v20 = vrot.slane %v380_v1, 1  ;;  %v406_v9 = vadd.f32 %v405_v14, %v404_v59  ;;  %v412_v21 = vrot.slane %v411_v4, 4 }
 0x1d6   :  { %v394_v22 = vadd.f32 %v393_v15, %v392_v62  ;;  %v418_v23 = vsel %vm54_vm0, %v374_v39, 0.0  ;;  %v501_v24 = vsel %vm446_vm5, %v485_v60, %v500_v0  ;;  %v403_v8 = vadd.f32 %v402_v42, %v401_v63 }
 0x1d7   :  { %v375_v25 = vmul.f32 %v367_v18, %v801_v13  ;;  %v382_v27 = vadd.f32 %v381_v20, %v380_v1  ;;  %v407_v29 = vrot.slane %v406_v9, 2  ;;  %v413_v2 = vadd.f32 %v412_v21, %v411_v4 }
 0x1d8   :  { %v395_v31 = vrot.slane %v394_v22, 1  ;;  %v419_v32 = vrot.slane %v418_v23, 4  ;;  %v497_v54 = vrot.slane %v367_v18, %v857_v30  ;;  %v502_v33 = vsel %vm448_vm6, %v489_v16, %v501_v24 }
 0x1d9   :  { %v408_v34 = vadd.f32 %v407_v29, %v406_v9  ;;  %v414_v35 = vrot.slane %v413_v2, 2  ;;  %v425_v17 = vsel %vm54_vm0, %v375_v25, 0.0  ;;  %v503_v13 = vsel %vm450_vm7, %v493_v11, %v502_v33 }
 0x1da   :  { %v396_v36 = vadd.f32 %v395_v31, %v394_v22  ;;  %v420_v37 = vadd.f32 %v419_v32, %v418_v23  ;;  %v426_v38 = vrot.slane %v425_v17, 4  ;;  %v441_v40 = vsel %vm440_vm2, %v389_v6, %v382_v27 }
 0x1db   :  { %v409_v19 = vrot.slane %v408_v34, 1  ;;  %v415_v12 = vadd.f32 %v414_v35, %v413_v2  ;;  %v504_v41 = vsel %vm452_vm8, %v497_v54, %v503_v13 }
 0x1dc   :  { %v421_v30 = vrot.slane %v420_v37, 2  ;;  %v427_v43 = vadd.f32 %v426_v38, %v425_v17  ;;  %v443_v44 = vsel %vm442_vm3, %v396_v36, %v441_v40  ;;  %507 = vst.msk [vmem:[#allocation6] sm:$0xff] %vm506_vm9, %v504_v41 }
 0x1dd   :  { %v410_v5 = vadd.f32 %v409_v19, %v408_v34  ;;  %v416_v45 = vrot.slane %v415_v12, 1  ;;  %v445_v46 = vsel %vm444_vm4, %v403_v8, %v443_v44 }
 0x1de   :  { %677 = shalt.err (!%p674_p12)
}
 0x1df   :  { %s678_s20 = scalar_lea.hbm %s932_s5, 128 }
 0x1e0   :  { %p679_p13 = scmp.ne.s32.totalorder %s932_s5, %s678_s20  ;;  %p682_p0 = scmp.lt.u32.totalorder %s678_s20, %s932_s5 }
 0x1e2   :  { %p684_p1 = pnand %p682_p0, %p679_p13 }
 0x1e4   :  { %687 = shalt.err (!%p684_p1)
}
 0x1e5   :  { %527 = dma.vmem_to_hbm [thread:$0]  %s525_s16, 128, %s932_s5, [#allocation7]   ;;  %v422_v26 = vadd.f32 %v421_v30, %v420_v37  ;;  %v428_v47 = vrot.slane %v427_v43, 2  ;;  %v417_v48 = vadd.f32 %v416_v45, %v415_v12  ;;  %v447_v49 = vsel %vm446_vm5, %v410_v5, %v445_v46 }
 0x1e6   :  { %s720_s27 = smov [#allocation5]  }
 0x1e7   :  { %v423_v50 = vrot.slane %v422_v26, 1  ;;  %v429_v28 = vadd.f32 %v428_v47, %v427_v43  ;;  %v449_v10 = vsel %vm448_vm6, %v417_v48, %v447_v49  ;;  %s514_s28 = sshll.u32 %s720_s27, 4  ;;  %s515_s28 = int_to_ptr.vmem [resolvable:$true] %s514_s28 }
 0x1e8   :  { %s688_s5 = scalar_lea.vmem %s515_s28, 128  ;;  %p693_p3 = scmp.lt.s32.totalorder %s515_s28, %s515_s28 }
 0x1e9   :  { %v424_v51 = vadd.f32 %v423_v50, %v422_v26  ;;  %v430_v52 = vrot.slane %v429_v28, 1  ;;  %p689_p2 = scmp.ne.s32.totalorder %s515_s28, %s688_s5  ;;  %p694_p4 = scmp.lt.s32.totalorder %s688_s5, %s688_s5 }
 0x1eb   :  { %v431_v53 = vadd.f32 %v430_v52, %v429_v28  ;;  %v451_v55 = vsel %vm450_vm7, %v424_v51, %v449_v10  ;;  %p695_p5 = por %p694_p4, %p693_p3 }
 0x1ed   :  { %v453_v56 = vsel %vm452_vm8, %v431_v53, %v451_v55  ;;  %p696_p6 = pnand %p695_p5, %p689_p2 }
 0x1ee   :  { %455 = vst.msk [vmem:[#allocation5] sm:$0xff] %vm54_vm0, %v453_v56 }
 0x1ef   :  { %699 = shalt.err (!%p696_p6)
}
 0x1f0   :  { %s700_s6 = scalar_lea.hbm %s931_s4, 128 }
 0x1f1   :  { %p701_p7 = scmp.ne.s32.totalorder %s931_s4, %s700_s6  ;;  %p704_p8 = scmp.lt.u32.totalorder %s700_s6, %s931_s4 }
 0x1f3   :  { %p706_p9 = pnand %p704_p8, %p701_p7 }
 0x1f5   :  { %709 = shalt.err (!%p706_p9)
}
 0x1f6   :  { %517 = dma.vmem_to_hbm [thread:$0]  %s515_s28, 128, %s931_s4, [#allocation4]  }
 0x1f7   :  { %712 = dma.done.wait [#allocation4], 128  }
 0x1f8   :  { %713 = vsyncadd [#allocation4], 4294967168 }
 0x1f9   :  { %714 = dma.done.wait [#allocation7], 128  }
 0x1fa   :  { %715 = vsyncadd [#allocation7], 4294967168 }
 0x1fb   :  { %534 = vsyncpa [#allocation3], 1 }
 0x1fc   :  { %535 = vsyncpa [#allocation4], 1 }
 0x1fd   :  { %536 = vsyncpa [#allocation7], 1 }

</bundles_post_ra>
